<compile_context>
chip_gen: v7x
topology: tpu7x:2x2x1
jax: 0.10.0
libtpu: 0.0.40
codegen_flags: <defaults>
</compile_context>

<pallas_src>
import functools

import jax
import jax.numpy as jnp
from jax.experimental import pallas as pl
from jax.experimental.pallas import tpu as pltpu


def _round_up(x, m):
    return (x + m - 1) // m * m


# ----------------------------------------------------------------------------
# Kernel
# ----------------------------------------------------------------------------
def vae_kernel(in_ref, w_ref, b_ref, out_ref, *,
               enc_layers, mu_layer, lv_layer, dec_layers,
               lane_x, lane_lat):
    """One grid step = one batch tile.

    Layer descriptors are static tuples:
        (w_row_offset, kpad, npad, apply_relu, bias_row_offset)
    with kpad/npad multiples of 128, so every slice below is lane/sublane
    tile aligned and every dot is a full MXU tile.
    """
    f32 = jnp.float32

    def dense(h, layer):
        w_off, kpad, npad, relu, b_off = layer
        w = w_ref[w_off:w_off + kpad, 0:npad]        # 128-aligned static slice
        b = b_ref[b_off:b_off + 1, 0:npad]           # (1, npad) sublane-aligned row
        y = jnp.dot(h, w, preferred_element_type=f32) + b
        if relu:
            y = jnp.maximum(y, 0.0)
        return y

    # ---- fused lane-dense input slab: [x || eps] ----
    h = in_ref[:, 0:lane_x]
    eps = in_ref[:, lane_x:lane_x + lane_lat]

    # ---- encoder ----
    for layer in enc_layers:
        h = dense(h, layer)

    # ---- latent heads (each lane-0 aligned in its own 128-lane block) ----
    mu = dense(h, mu_layer)
    logvar = dense(h, lv_layer)

    # ---- reparameterize: z = mu + eps * exp(0.5 * logvar)  (VPU + EUP only) ----
    z = mu + eps * jnp.exp(0.5 * logvar)

    # ---- decoder + final layer ----
    h = z
    for layer in dec_layers:
        h = dense(h, layer)

    # ---- fused lane-dense output slab: [recon || mu || logvar] ----
    out_ref[:, 0:lane_x] = h
    out_ref[:, lane_x:lane_x + lane_lat] = mu
    out_ref[:, lane_x + lane_lat:lane_x + 2 * lane_lat] = logvar


# ----------------------------------------------------------------------------
# Parameter init (matches nn.Linear default init; weights pre-transposed)
# ----------------------------------------------------------------------------
def init_vae_params(key, input_dim, latent_dim, hidden_dims=(128, 64)):
    """Weights stored as [in_features, out_features]; biases as [1, out_features]."""
    dims_enc = [input_dim] + list(hidden_dims)
    dims_dec = [latent_dim] + list(hidden_dims[::-1])

    def linear(k, fan_in, fan_out):
        kw, kb = jax.random.split(k)
        bound = 1.0 / jnp.sqrt(float(fan_in))
        w = jax.random.uniform(kw, (fan_in, fan_out), jnp.float32, -bound, bound)
        b = jax.random.uniform(kb, (1, fan_out), jnp.float32, -bound, bound)
        return w, b

    params = []
    keys = jax.random.split(key, 2 * len(hidden_dims) + 3)
    ki = iter(keys)
    for i in range(len(hidden_dims)):                          # encoder
        params.extend(linear(next(ki), dims_enc[i], dims_enc[i + 1]))
    params.extend(linear(next(ki), dims_enc[-1], latent_dim))  # fc_mu
    params.extend(linear(next(ki), dims_enc[-1], latent_dim))  # fc_logvar
    for i in range(len(hidden_dims)):                          # decoder
        params.extend(linear(next(ki), dims_dec[i], dims_dec[i + 1]))
    params.extend(linear(next(ki), dims_dec[-1], input_dim))   # final layer
    return params


# ----------------------------------------------------------------------------
# One-time packing of the 14 params into two VMEM-resident slabs.
# Every layer block is padded to 128-row x 128-lane multiples.
# ----------------------------------------------------------------------------
def pack_vae_params(params, input_dim, latent_dim, hidden_dims):
    hd = list(hidden_dims)
    n_h = len(hd)
    it = iter(params)
    enc = [(next(it), next(it)) for _ in range(n_h)]
    w_mu, b_mu = next(it), next(it)
    w_lv, b_lv = next(it), next(it)
    dec = [(next(it), next(it)) for _ in range(n_h)]
    w_f, b_f = next(it), next(it)

    weights = [w for w, _ in enc] + [w_mu, w_lv] + [w for w, _ in dec] + [w_f]
    biases = [b for _, b in enc] + [b_mu, b_lv] + [b for _, b in dec] + [b_f]
    relus = [True] * n_h + [False, False] + [True] * n_h + [False]
    n_layers = len(weights)

    slab_w = max(_round_up(w.shape[1], 128) for w in weights)

    # weight slab: layer i at row offset off_i (multiple of 128), block padded to
    # [round_up(in,128), round_up(out,128)] -> every dot is a full MXU tile.
    offs, rows = [], 0
    for w in weights:
        offs.append(rows)
        rows += _round_up(w.shape[0], 128)
    w_slab = jnp.zeros((rows, slab_w), jnp.float32)
    for off, w in zip(offs, weights):
        w_slab = w_slab.at[off:off + w.shape[0], :w.shape[1]].set(w)

    # bias slab: bias i on row 8*i (sublane-aligned single-row full-lane reads)
    b_slab = jnp.zeros((8 * n_layers, slab_w), jnp.float32)
    for i, b in enumerate(biases):
        b_slab = b_slab.at[8 * i, :b.shape[1]].set(b[0])

    layers = tuple(
        (offs[i],
         _round_up(weights[i].shape[0], 128),
         _round_up(weights[i].shape[1], 128),
         relus[i],
         8 * i)
        for i in range(n_layers))

    return {
        "w_slab": w_slab,
        "b_slab": b_slab,
        "enc_layers": layers[:n_h],
        "mu_layer": layers[n_h],
        "lv_layer": layers[n_h + 1],
        "dec_layers": layers[n_h + 2:],
        "input_dim": input_dim,
        "latent_dim": latent_dim,
    }


# ----------------------------------------------------------------------------
# Wrapper
# ----------------------------------------------------------------------------
def vae_forward(x, eps, packed):
    w_slab = packed["w_slab"]
    b_slab = packed["b_slab"]
    input_dim = packed["input_dim"]
    latent_dim = packed["latent_dim"]

    lane_x = _round_up(input_dim, 128)     # recon / x segment width
    lane_lat = _round_up(latent_dim, 128)  # mu / logvar / eps segment width
    in_w = lane_x + lane_lat
    out_w = lane_x + 2 * lane_lat

    batch = x.shape[0]
    # Pad batch to a sublane multiple (no divisibility assert); pick a big tile
    # (amortizes ~0.35us/step overhead) but keep >=2 grid steps when possible so
    # ("parallel",) can shard tiles across both v7x TensorCores.
    pb = _round_up(max(batch, 8), 8)
    if pb <= 8:
        bm = pb
    else:
        bm = min(1024, _round_up(pb // 2, 8))
    pb = _round_up(pb, bm)
    grid = (pb // bm,)

    # Single lane-dense input slab per tile: [x || eps], zero-padded.
    # (Padded eps lanes MUST be zero so padded z lanes stay zero in the decoder.)
    in_slab = jnp.zeros((pb, in_w), jnp.float32)
    in_slab = in_slab.at[:batch, :input_dim].set(x.astype(jnp.float32))
    in_slab = in_slab.at[:batch, lane_x:lane_x + latent_dim].set(
        eps.astype(jnp.float32))

    kernel = functools.partial(
        vae_kernel,
        enc_layers=packed["enc_layers"],
        mu_layer=packed["mu_layer"],
        lv_layer=packed["lv_layer"],
        dec_layers=packed["dec_layers"],
        lane_x=lane_x,
        lane_lat=lane_lat,
    )

    out = pl.pallas_call(
        kernel,
        out_shape=jax.ShapeDtypeStruct((pb, out_w), jnp.float32),
        grid_spec=pltpu.PrefetchScalarGridSpec(
            num_scalar_prefetch=0,
            grid=grid,
            in_specs=[
                pl.BlockSpec((bm, in_w), lambda i: (i, 0)),    # [x || eps] tile
                pl.BlockSpec(w_slab.shape, lambda i: (0, 0)),  # weights (resident)
                pl.BlockSpec(b_slab.shape, lambda i: (0, 0)),  # biases  (resident)
            ],
            out_specs=pl.BlockSpec((bm, out_w), lambda i: (i, 0)),  # recon|mu|logvar
        ),
        compiler_params=pltpu.CompilerParams(
            dimension_semantics=("parallel",),   # shard batch tiles across cores
        ),
    )(in_slab, w_slab, b_slab)

    recon = out[:batch, :input_dim]
    mu = out[:batch, lane_x:lane_x + latent_dim]
    logvar = out[:batch, lane_x + lane_lat:lane_x + lane_lat + latent_dim]
    return recon, mu, logvar


# ----------------------------------------------------------------------------
# Pure-JAX reference (uses the original, unpacked 14-param list)
# ----------------------------------------------------------------------------
def vae_forward_ref(x, eps, params):
    (w_e1, b_e1, w_e2, b_e2, w_mu, b_mu, w_lv, b_lv,
     w_d1, b_d1, w_d2, b_d2, w_f, b_f) = params
    h = jnp.maximum(x @ w_e1 + b_e1, 0.0)
    h = jnp.maximum(h @ w_e2 + b_e2, 0.0)
    mu = h @ w_mu + b_mu
    logvar = h @ w_lv + b_lv
    z = mu + eps * jnp.exp(0.5 * logvar)
    d = jnp.maximum(z @ w_d1 + b_d1, 0.0)
    d = jnp.maximum(d @ w_d2 + b_d2, 0.0)
    recon = d @ w_f + b_f
    return recon, mu, logvar


if __name__ == "__main__":
    batch = 8
    input_dim = 32
    latent_dim = 16
    hidden_dims = (128, 64)

    key = jax.random.PRNGKey(0)
    k_x, k_eps, k_params = jax.random.split(key, 3)

    x = jax.random.normal(k_x, (batch, input_dim), jnp.float32)
    eps = jax.random.normal(k_eps, (batch, latent_dim), jnp.float32)
    params = init_vae_params(k_params, input_dim, latent_dim, hidden_dims)

    # pack once (weights are static for inference) — not a per-call cost
    packed = pack_vae_params(params, input_dim, latent_dim, hidden_dims)

    recon, mu, logvar = vae_forward(x, eps, packed)
    jax.block_until_ready((recon, mu, logvar))

    recon_r, mu_r, logvar_r = vae_forward_ref(x, eps, params)
    assert recon.shape == (batch, input_dim)
    assert mu.shape == (batch, latent_dim)
    assert logvar.shape == (batch, latent_dim)
    assert jnp.allclose(recon, recon_r, atol=1e-4, rtol=1e-4)
    assert jnp.allclose(mu, mu_r, atol=1e-4, rtol=1e-4)
    assert jnp.allclose(logvar, logvar_r, atol=1e-4, rtol=1e-4)

    print("KERNEL_OK")
</pallas_src>

<mosaic_0001>
module attributes {stable_mosaic.version = 11 : i64} {
  func.func @vae_kernel(%arg0: i32, %arg1: memref<8x256xf32, #tpu.memory_space<vmem>>, %arg2: memref<896x128xf32, #tpu.memory_space<vmem>>, %arg3: memref<56x128xf32, #tpu.memory_space<vmem>>, %arg4: memref<8x384xf32, #tpu.memory_space<vmem>>) attributes {dimension_semantics = [#tpu.dimension_semantics<parallel>], iteration_bounds = array<i64: 1>, scalar_prefetch = 0 : i64, scratch_operands = 0 : i64, tpu.core_type = #tpu.core_type<tc>, window_params = [{transform_indices = @transform_0, window_bounds = array<i64: 8, 256>}, {pipeline_mode = #tpu.pipeline_mode<synchronous>, transform_indices = @transform_1, window_bounds = array<i64: 896, 128>}, {pipeline_mode = #tpu.pipeline_mode<synchronous>, transform_indices = @transform_2, window_bounds = array<i64: 56, 128>}, {transform_indices = @transform_3, window_bounds = array<i64: 8, 384>}]} {
    %c0 = arith.constant 0 : index
    %c0_0 = arith.constant 0 : index
    %0 = vector.load %arg1[%c0, %c0_0] : memref<8x256xf32, #tpu.memory_space<vmem>>, vector<8x128xf32>
    %c0_1 = arith.constant 0 : index
    %c128 = arith.constant 128 : index
    %1 = vector.load %arg1[%c0_1, %c128] : memref<8x256xf32, #tpu.memory_space<vmem>>, vector<8x128xf32>
    %c0_2 = arith.constant 0 : index
    %c0_3 = arith.constant 0 : index
    %2 = vector.load %arg2[%c0_2, %c0_3] : memref<896x128xf32, #tpu.memory_space<vmem>>, vector<128x128xf32>
    %c0_4 = arith.constant 0 : index
    %c0_5 = arith.constant 0 : index
    %3 = vector.load %arg3[%c0_4, %c0_5] : memref<56x128xf32, #tpu.memory_space<vmem>>, vector<1x128xf32>
    %cst = arith.constant dense<0.000000e+00> : vector<8x128xf32>
    %4 = tpu.matmul %0, %2, %cst {dimension_numbers = #tpu.dot_dimension_numbers<[1], [0], [0], [1], [0, 0, 1, 1], [], []>} : vector<8x128xf32>, vector<128x128xf32>, vector<8x128xf32> -> vector<8x128xf32>
    %5 = vector.broadcast %3 : vector<1x128xf32> to vector<8x128xf32>
    %6 = arith.addf %4, %5 : vector<8x128xf32>
    %cst_6 = arith.constant 0.000000e+00 : f32
    %7 = vector.broadcast %cst_6 : f32 to vector<8x128xf32>
    %8 = arith.maximumf %6, %7 : vector<8x128xf32>
    %c128_7 = arith.constant 128 : index
    %c0_8 = arith.constant 0 : index
    %9 = vector.load %arg2[%c128_7, %c0_8] : memref<896x128xf32, #tpu.memory_space<vmem>>, vector<128x128xf32>
    %c8 = arith.constant 8 : index
    %c0_9 = arith.constant 0 : index
    %10 = vector.load %arg3[%c8, %c0_9] : memref<56x128xf32, #tpu.memory_space<vmem>>, vector<1x128xf32>
    %cst_10 = arith.constant dense<0.000000e+00> : vector<8x128xf32>
    %11 = tpu.matmul %8, %9, %cst_10 {dimension_numbers = #tpu.dot_dimension_numbers<[1], [0], [0], [1], [0, 0, 1, 1], [], []>} : vector<8x128xf32>, vector<128x128xf32>, vector<8x128xf32> -> vector<8x128xf32>
    %12 = vector.broadcast %10 : vector<1x128xf32> to vector<8x128xf32>
    %13 = arith.addf %11, %12 : vector<8x128xf32>
    %cst_11 = arith.constant 0.000000e+00 : f32
    %14 = vector.broadcast %cst_11 : f32 to vector<8x128xf32>
    %15 = arith.maximumf %13, %14 : vector<8x128xf32>
    %c256 = arith.constant 256 : index
    %c0_12 = arith.constant 0 : index
    %16 = vector.load %arg2[%c256, %c0_12] : memref<896x128xf32, #tpu.memory_space<vmem>>, vector<128x128xf32>
    %c16 = arith.constant 16 : index
    %c0_13 = arith.constant 0 : index
    %17 = vector.load %arg3[%c16, %c0_13] : memref<56x128xf32, #tpu.memory_space<vmem>>, vector<1x128xf32>
    %cst_14 = arith.constant dense<0.000000e+00> : vector<8x128xf32>
    %18 = tpu.matmul %15, %16, %cst_14 {dimension_numbers = #tpu.dot_dimension_numbers<[1], [0], [0], [1], [0, 0, 1, 1], [], []>} : vector<8x128xf32>, vector<128x128xf32>, vector<8x128xf32> -> vector<8x128xf32>
    %19 = vector.broadcast %17 : vector<1x128xf32> to vector<8x128xf32>
    %20 = arith.addf %18, %19 : vector<8x128xf32>
    %c384 = arith.constant 384 : index
    %c0_15 = arith.constant 0 : index
    %21 = vector.load %arg2[%c384, %c0_15] : memref<896x128xf32, #tpu.memory_space<vmem>>, vector<128x128xf32>
    %c24 = arith.constant 24 : index
    %c0_16 = arith.constant 0 : index
    %22 = vector.load %arg3[%c24, %c0_16] : memref<56x128xf32, #tpu.memory_space<vmem>>, vector<1x128xf32>
    %cst_17 = arith.constant dense<0.000000e+00> : vector<8x128xf32>
    %23 = tpu.matmul %15, %21, %cst_17 {dimension_numbers = #tpu.dot_dimension_numbers<[1], [0], [0], [1], [0, 0, 1, 1], [], []>} : vector<8x128xf32>, vector<128x128xf32>, vector<8x128xf32> -> vector<8x128xf32>
    %24 = vector.broadcast %22 : vector<1x128xf32> to vector<8x128xf32>
    %25 = arith.addf %23, %24 : vector<8x128xf32>
    %cst_18 = arith.constant 5.000000e-01 : f32
    %26 = vector.broadcast %cst_18 : f32 to vector<8x128xf32>
    %27 = arith.mulf %26, %25 : vector<8x128xf32>
    %28 = math.exp %27 : vector<8x128xf32>
    %29 = arith.mulf %1, %28 : vector<8x128xf32>
    %30 = arith.addf %20, %29 : vector<8x128xf32>
    %c512 = arith.constant 512 : index
    %c0_19 = arith.constant 0 : index
    %31 = vector.load %arg2[%c512, %c0_19] : memref<896x128xf32, #tpu.memory_space<vmem>>, vector<128x128xf32>
    %c32 = arith.constant 32 : index
    %c0_20 = arith.constant 0 : index
    %32 = vector.load %arg3[%c32, %c0_20] : memref<56x128xf32, #tpu.memory_space<vmem>>, vector<1x128xf32>
    %cst_21 = arith.constant dense<0.000000e+00> : vector<8x128xf32>
    %33 = tpu.matmul %30, %31, %cst_21 {dimension_numbers = #tpu.dot_dimension_numbers<[1], [0], [0], [1], [0, 0, 1, 1], [], []>} : vector<8x128xf32>, vector<128x128xf32>, vector<8x128xf32> -> vector<8x128xf32>
    %34 = vector.broadcast %32 : vector<1x128xf32> to vector<8x128xf32>
    %35 = arith.addf %33, %34 : vector<8x128xf32>
    %cst_22 = arith.constant 0.000000e+00 : f32
    %36 = vector.broadcast %cst_22 : f32 to vector<8x128xf32>
    %37 = arith.maximumf %35, %36 : vector<8x128xf32>
    %c640 = arith.constant 640 : index
    %c0_23 = arith.constant 0 : index
    %38 = vector.load %arg2[%c640, %c0_23] : memref<896x128xf32, #tpu.memory_space<vmem>>, vector<128x128xf32>
    %c40 = arith.constant 40 : index
    %c0_24 = arith.constant 0 : index
    %39 = vector.load %arg3[%c40, %c0_24] : memref<56x128xf32, #tpu.memory_space<vmem>>, vector<1x128xf32>
    %cst_25 = arith.constant dense<0.000000e+00> : vector<8x128xf32>
    %40 = tpu.matmul %37, %38, %cst_25 {dimension_numbers = #tpu.dot_dimension_numbers<[1], [0], [0], [1], [0, 0, 1, 1], [], []>} : vector<8x128xf32>, vector<128x128xf32>, vector<8x128xf32> -> vector<8x128xf32>
    %41 = vector.broadcast %39 : vector<1x128xf32> to vector<8x128xf32>
    %42 = arith.addf %40, %41 : vector<8x128xf32>
    %cst_26 = arith.constant 0.000000e+00 : f32
    %43 = vector.broadcast %cst_26 : f32 to vector<8x128xf32>
    %44 = arith.maximumf %42, %43 : vector<8x128xf32>
    %c768 = arith.constant 768 : index
    %c0_27 = arith.constant 0 : index
    %45 = vector.load %arg2[%c768, %c0_27] : memref<896x128xf32, #tpu.memory_space<vmem>>, vector<128x128xf32>
    %c48 = arith.constant 48 : index
    %c0_28 = arith.constant 0 : index
    %46 = vector.load %arg3[%c48, %c0_28] : memref<56x128xf32, #tpu.memory_space<vmem>>, vector<1x128xf32>
    %cst_29 = arith.constant dense<0.000000e+00> : vector<8x128xf32>
    %47 = tpu.matmul %44, %45, %cst_29 {dimension_numbers = #tpu.dot_dimension_numbers<[1], [0], [0], [1], [0, 0, 1, 1], [], []>} : vector<8x128xf32>, vector<128x128xf32>, vector<8x128xf32> -> vector<8x128xf32>
    %48 = vector.broadcast %46 : vector<1x128xf32> to vector<8x128xf32>
    %49 = arith.addf %47, %48 : vector<8x128xf32>
    %c0_30 = arith.constant 0 : index
    %c0_31 = arith.constant 0 : index
    %50 = vector.load %arg4[%c0_30, %c0_31] : memref<8x384xf32, #tpu.memory_space<vmem>>, vector<8x128xf32>
    tpu.vector_store %arg4[%c0_30, %c0_31], %49 {strides = array<i32>} : memref<8x384xf32, #tpu.memory_space<vmem>>, vector<8x128xf32>,
    %c0_32 = arith.constant 0 : index
    %c128_33 = arith.constant 128 : index
    %51 = vector.load %arg4[%c0_32, %c128_33] : memref<8x384xf32, #tpu.memory_space<vmem>>, vector<8x128xf32>
    tpu.vector_store %arg4[%c0_32, %c128_33], %20 {strides = array<i32>} : memref<8x384xf32, #tpu.memory_space<vmem>>, vector<8x128xf32>,
    %c0_34 = arith.constant 0 : index
    %c256_35 = arith.constant 256 : index
    %52 = vector.load %arg4[%c0_34, %c256_35] : memref<8x384xf32, #tpu.memory_space<vmem>>, vector<8x128xf32>
    tpu.vector_store %arg4[%c0_34, %c256_35], %25 {strides = array<i32>} : memref<8x384xf32, #tpu.memory_space<vmem>>, vector<8x128xf32>,
    return
  }
  func.func @transform_0(%arg0: i32) -> (i32, i32) {
    %c0_i32 = arith.constant 0 : i32
    %c0_i32_0 = arith.constant 0 : i32
    return %arg0, %c0_i32 : i32, i32
  }
  func.func @transform_1(%arg0: i32) -> (i32, i32) {
    %c0_i32 = arith.constant 0 : i32
    %c0_i32_0 = arith.constant 0 : i32
    %c0_i32_1 = arith.constant 0 : i32
    return %c0_i32, %c0_i32_0 : i32, i32
  }
  func.func @transform_2(%arg0: i32) -> (i32, i32) {
    %c0_i32 = arith.constant 0 : i32
    %c0_i32_0 = arith.constant 0 : i32
    %c0_i32_1 = arith.constant 0 : i32
    return %c0_i32, %c0_i32_0 : i32, i32
  }
  func.func @transform_3(%arg0: i32) -> (i32, i32) {
    %c0_i32 = arith.constant 0 : i32
    %c0_i32_0 = arith.constant 0 : i32
    return %arg0, %c0_i32 : i32, i32
  }
}

</mosaic_0001>

<bundles_post_ra>
// kernel: tpu_custom_call.1
= control target key start
LH: loop header
LB: loop body
LE: loop exit
PB: predicated region body
PF: predicated region fallthrough
CT: control target
= control target key end

     0   :  { %8 = vsyncpa [#allocation3], 0  ;;  %s1518_s0 = inlined_call_operand.hbm [shape: f32[8,256], index: 0, kind: input, shape index: {}]   ;;  %s1519_s1 = inlined_call_operand.hbm [shape: f32[896,128], index: 1, kind: input, shape index: {}]   ;;  %s1520_s2 = inlined_call_operand.hbm [shape: f32[56,128], index: 2, kind: input, shape index: {}]   ;;  %s1521_s3 = inlined_call_operand.hbm [shape: f32[8,384], index: 3, kind: output, shape index: {}]  }
   0x1   :  { %9 = vsyncpa [#allocation6], 0 }
   0x2   :  { %10 = vsyncpa [#allocation4], 0  ;;  %s1365_s12 = smov [#allocation5]   ;;  %s1271_s16 = scalar_lea.hbm %s1519_s1, 14336 }
   0x3   :  { %s26_s13 = sshll.u32 %s1365_s12, 4  ;;  %p1272_p0 = scmp.ne.s32.totalorder %s1519_s1, %s1271_s16  ;;  %s27_s13 = int_to_ptr.vmem [resolvable:$true] %s26_s13 }
   0x4   :  { %p1275_p1 = scmp.lt.u32.totalorder %s1271_s16, %s1519_s1 }
   0x6   :  { %p1277_p2 = pnand %p1275_p1, %p1272_p0 }
   0x8   :  { %1280 = shalt.err (!%p1277_p2)
}
   0x9   :  { %s1281_s21 = scalar_lea.vmem %s27_s13, 14336  ;;  %p1286_p4 = scmp.lt.s32.totalorder %s27_s13, %s27_s13 }
   0xa   :  { %p1282_p3 = scmp.ne.s32.totalorder %s27_s13, %s1281_s21  ;;  %p1287_p5 = scmp.lt.s32.totalorder %s1281_s21, %s1281_s21 }
   0xc   :  { %p1288_p6 = por %p1287_p5, %p1286_p4 }
   0xe   :  { %p1289_p7 = pnand %p1288_p6, %p1282_p3 }
  0x10   :  { %1292 = shalt.err (!%p1289_p7)
}
  0x11   :  { %s1366_s22 = smov 128   ;;  %s1367_s23 = smov 8  }
  0x12   :  { %32 = dma.hbm_to_vmem [thread:$0]  %s1519_s1, 14336, %s27_s13, [#allocation6], %s1366_s22, %s1366_s22, %s1367_s23  }
  0x13   :  { %s1368_s26 = smov [#allocation2]   ;;  %s1369_s28 = smov [#allocation7]  }
  0x14   :  { %s17_s27 = sshll.u32 %s1368_s26, 4  ;;  %s38_s29 = sshll.u32 %s1369_s28, 4  ;;  %s18_s27 = int_to_ptr.vmem [resolvable:$true] %s17_s27  ;;  %s39_s29 = int_to_ptr.vmem [resolvable:$true] %s38_s29 }
  0x15   :  { %s1293_s5 = scalar_lea.hbm %s1518_s0, 256 }
  0x16   :  { %p1294_p8 = scmp.ne.s32.totalorder %s1518_s0, %s1293_s5  ;;  %p1297_p9 = scmp.lt.u32.totalorder %s1293_s5, %s1518_s0 }
  0x18   :  { %p1299_p10 = pnand %p1297_p9, %p1294_p8 }
  0x1a   :  { %1302 = shalt.err (!%p1299_p10)
}
  0x1b   :  { %s1303_s1 = scalar_lea.vmem %s18_s27, 256  ;;  %p1308_p12 = scmp.lt.s32.totalorder %s18_s27, %s18_s27 }
  0x1c   :  { %p1304_p11 = scmp.ne.s32.totalorder %s18_s27, %s1303_s1  ;;  %p1309_p13 = scmp.lt.s32.totalorder %s1303_s1, %s1303_s1 }
  0x1e   :  { %p1310_p0 = por %p1309_p13, %p1308_p12 }
  0x20   :  { %p1311_p1 = pnand %p1310_p0, %p1304_p11 }
  0x22   :  { %1314 = shalt.err (!%p1311_p1)
}
  0x23   :  { %20 = dma.hbm_to_vmem [thread:$0]  %s1518_s0, 256, %s18_s27, [#allocation3]  }
  0x24   :  { %s1315_s14 = scalar_lea.hbm %s1520_s2, 896 }
  0x25   :  { %p1316_p2 = scmp.ne.s32.totalorder %s1520_s2, %s1315_s14  ;;  %p1319_p3 = scmp.lt.u32.totalorder %s1315_s14, %s1520_s2 }
  0x27   :  { %p1321_p4 = pnand %p1319_p3, %p1316_p2 }
  0x29   :  { %1324 = shalt.err (!%p1321_p4)
}
  0x2a   :  { %s1325_s19 = scalar_lea.vmem %s39_s29, 896  ;;  %p1330_p6 = scmp.lt.s32.totalorder %s39_s29, %s39_s29 }
  0x2b   :  { %p1326_p5 = scmp.ne.s32.totalorder %s39_s29, %s1325_s19  ;;  %p1331_p7 = scmp.lt.s32.totalorder %s1325_s19, %s1325_s19 }
  0x2d   :  { %p1332_p8 = por %p1331_p7, %p1330_p6 }
  0x2f   :  { %p1333_p9 = pnand %p1332_p8, %p1326_p5 }
  0x31   :  { %1336 = shalt.err (!%p1333_p9)
}
  0x32   :  { %44 = dma.hbm_to_vmem [thread:$0]  %s1520_s2, 896, %s39_s29, [#allocation6], %s1366_s22, %s1366_s22, %s1367_s23  }
  0x33   :  { %1359 = dma.done.wait [#allocation3], 256  }
  0x34   :  { %1360 = vsyncadd [#allocation3], 4294967040 }
  0x35   :  { %1361 = dma.done.wait [#allocation6], 15232  }
  0x36   :  { %1362 = vsyncadd [#allocation6], 4294952064  ;;  %v1370_v0 = vmov 0.0|0.0   ;;  %vm1371_vm0 = vmmov 0   ;;  %v1372_v1 = vmov 0.0   ;;  %v56_v2 = vld [vmem:[#allocation5] sm:$0xff] }
  0x37   :  { %1092 = vmatprep.subr.bf16.mxu0 %v1370_v0  ;;  %879 = vmatprep.mubr.msk.f32.mxu0 %vm1371_vm0, %v1372_v1  ;;  %v57_v3 = vld [vmem:[#allocation5 + $0x8] sm:$0xff]  ;;  %v58_v4 = vld [vmem:[#allocation5 + $0x10] sm:$0xff]  ;;  %v59_v6 = vld [vmem:[#allocation5 + $0x18] sm:$0xff]  ;;  %s1373_s2 = smov [#allocation8]  }
  0x38   :  { %1116 = vmatprep.subr.bf16.mxu1 %v1370_v0  ;;  %914 = vmatprep.mubr.msk.f32.mxu1 %vm1371_vm0, %v1372_v1  ;;  %v1093_v5 = vpack.c.bf16 %v57_v3, %v56_v2  ;;  %v1096_v7 = vpack.c.bf16 %v59_v6, %v58_v4  ;;  %v60_v8 = vld [vmem:[#allocation5 + $0x20] sm:$0xff]  ;;  %v61_v9 = vld [vmem:[#allocation5 + $0x28] sm:$0xff]  ;;  %v150_v12 = vld [vmem:[#allocation5 + $0x90] sm:$0xff]  ;;  %s711_s21 = sshll.u32 %s1373_s2, 4  ;;  %s712_s21 = int_to_ptr.vmem [resolvable:$true] %s711_s21 }
  0x39   :  { %v148_v10 = vld [vmem:[#allocation5 + $0x80] sm:$0xff]  ;;  %v149_v11 = vld [vmem:[#allocation5 + $0x88] sm:$0xff]  ;;  %v151_v13 = vld [vmem:[#allocation5 + $0x98] sm:$0xff]  ;;  %v1099_v14 = vpack.c.bf16 %v61_v9, %v60_v8  ;;  %s1337_s22 = scalar_lea.vmem %s712_s21, 384  ;;  %p1342_p11 = scmp.lt.s32.totalorder %s712_s21, %s712_s21 }
  0x3a   :  { %1094 = vmatpush3.bf16.msra.mxu0 %v1093_v5  ;;  %v1117_v15 = vpack.c.bf16 %v149_v11, %v148_v10  ;;  %v62_v16 = vld [vmem:[#allocation5 + $0x30] sm:$0xff]  ;;  %v63_v17 = vld [vmem:[#allocation5 + $0x38] sm:$0xff]  ;;  %v1120_v18 = vpack.c.bf16 %v151_v13, %v150_v12  ;;  %v152_v19 = vld [vmem:[#allocation5 + $0xa0] sm:$0xff]  ;;  %p1338_p10 = scmp.ne.s32.totalorder %s712_s21, %s1337_s22  ;;  %p1343_p12 = scmp.lt.s32.totalorder %s1337_s22, %s1337_s22 }
  0x3b   :  { %1095 = vmatprep.subr.bf16.mxu0 %v1370_v0  ;;  %v153_v20 = vld [vmem:[#allocation5 + $0xa8] sm:$0xff]  ;;  %v1102_v21 = vpack.c.bf16 %v63_v17, %v62_v16  ;;  %v64_v22 = vld [vmem:[#allocation5 + $0x40] sm:$0xff]  ;;  %v154_v25 = vld [vmem:[#allocation5 + $0xb0] sm:$0xff] }
  0x3c   :  { %1118 = vmatpush3.bf16.msra.mxu1 %v1117_v15  ;;  %v65_v23 = vld [vmem:[#allocation5 + $0x48] sm:$0xff]  ;;  %v1123_v24 = vpack.c.bf16 %v153_v20, %v152_v19  ;;  %v155_v26 = vld [vmem:[#allocation5 + $0xb8] sm:$0xff]  ;;  %v66_v28 = vld [vmem:[#allocation5 + $0x50] sm:$0xff]  ;;  %p1344_p13 = por %p1343_p12, %p1342_p11 }
  0x3d   :  { %1119 = vmatprep.subr.bf16.mxu1 %v1370_v0  ;;  %v1105_v27 = vpack.c.bf16 %v65_v23, %v64_v22  ;;  %v67_v29 = vld [vmem:[#allocation5 + $0x58] sm:$0xff]  ;;  %v1126_v30 = vpack.c.bf16 %v155_v26, %v154_v25  ;;  %v156_v31 = vld [vmem:[#allocation5 + $0xc0] sm:$0xff]  ;;  %v157_v32 = vld [vmem:[#allocation5 + $0xc8] sm:$0xff] }
  0x3e   :  { %1097 = vmatpush3.bf16.msra.mxu0 %v1096_v7  ;;  %v1108_v33 = vpack.c.bf16 %v67_v29, %v66_v28  ;;  %v68_v34 = vld [vmem:[#allocation5 + $0x60] sm:$0xff]  ;;  %v69_v35 = vld [vmem:[#allocation5 + $0x68] sm:$0xff]  ;;  %v1129_v36 = vpack.c.bf16 %v157_v32, %v156_v31  ;;  %v158_v37 = vld [vmem:[#allocation5 + $0xd0] sm:$0xff]  ;;  %p1345_p0 = pnand %p1344_p13, %p1338_p10 }
  0x3f   :  { %1098 = vmatprep.subr.bf16.mxu0 %v1370_v0  ;;  %v159_v38 = vld [vmem:[#allocation5 + $0xd8] sm:$0xff]  ;;  %v1111_v39 = vpack.c.bf16 %v69_v35, %v68_v34  ;;  %v70_v40 = vld [vmem:[#allocation5 + $0x70] sm:$0xff]  ;;  %v160_v43 = vld [vmem:[#allocation5 + $0xe0] sm:$0xff] }
  0x40   :  { %1121 = vmatpush3.bf16.msra.mxu1 %v1120_v18  ;;  %v71_v41 = vld [vmem:[#allocation5 + $0x78] sm:$0xff]  ;;  %v1132_v42 = vpack.c.bf16 %v159_v38, %v158_v37  ;;  %v161_v44 = vld [vmem:[#allocation5 + $0xe8] sm:$0xff]  ;;  %v54_v47 = vld [vmem:[#allocation2] sm:$0xff] }
  0x41   :  { %1122 = vmatprep.subr.bf16.mxu1 %v1370_v0  ;;  %v1114_v45 = vpack.c.bf16 %v71_v41, %v70_v40  ;;  %v1135_v46 = vpack.c.bf16 %v161_v44, %v160_v43  ;;  %v162_v48 = vld [vmem:[#allocation5 + $0xf0] sm:$0xff]  ;;  %v163_v49 = vld [vmem:[#allocation5 + $0xf8] sm:$0xff]  ;;  %v240_v51 = vld [vmem:[#allocation5 + $0x100] sm:$0xff] }
  0x42   :  { %1100 = vmatpush3.bf16.msra.mxu0 %v1099_v14  ;;  %v1138_v50 = vpack.c.bf16 %v163_v49, %v162_v48  ;;  %v241_v52 = vld [vmem:[#allocation5 + $0x108] sm:$0xff]  ;;  %v242_v54 = vld [vmem:[#allocation5 + $0x110] sm:$0xff]  ;;  %v243_v55 = vld [vmem:[#allocation5 + $0x118] sm:$0xff] }
  0x43   :  { %1101 = vmatprep.subr.bf16.mxu0 %v1370_v0  ;;  %v1141_v53 = vpack.c.bf16 %v241_v52, %v240_v51  ;;  %v1144_v56 = vpack.c.bf16 %v243_v55, %v242_v54  ;;  %v244_v57 = vld [vmem:[#allocation5 + $0x120] sm:$0xff]  ;;  %v245_v58 = vld [vmem:[#allocation5 + $0x128] sm:$0xff]  ;;  %v246_v60 = vld [vmem:[#allocation5 + $0x130] sm:$0xff] }
  0x44   :  { %1124 = vmatpush3.bf16.msra.mxu1 %v1123_v24  ;;  %v1147_v59 = vpack.c.bf16 %v245_v58, %v244_v57  ;;  %v247_v61 = vld [vmem:[#allocation5 + $0x138] sm:$0xff]  ;;  %v248_v63 = vld [vmem:[#allocation5 + $0x140] sm:$0xff]  ;;  %v249_v2 = vld [vmem:[#allocation5 + $0x148] sm:$0xff] }
  0x45   :  { %1125 = vmatprep.subr.bf16.mxu1 %v1370_v0  ;;  %v1150_v62 = vpack.c.bf16 %v247_v61, %v246_v60  ;;  %v1153_v3 = vpack.c.bf16 %v249_v2, %v248_v63  ;;  %v250_v4 = vld [vmem:[#allocation5 + $0x150] sm:$0xff]  ;;  %v251_v5 = vld [vmem:[#allocation5 + $0x158] sm:$0xff]  ;;  %v252_v7 = vld [vmem:[#allocation5 + $0x160] sm:$0xff] }
  0x46   :  { %1103 = vmatpush3.bf16.msra.mxu0 %v1102_v21  ;;  %v1156_v6 = vpack.c.bf16 %v251_v5, %v250_v4  ;;  %v253_v8 = vld [vmem:[#allocation5 + $0x168] sm:$0xff]  ;;  %v721_v10 = vld [vmem:[#allocation7] ss:$0 sm:$0xff]  ;;  %v333_v18 = vld [vmem:[#allocation5 + $0x190] sm:$0xff] }
  0x47   :  { %1104 = vmatprep.subr.bf16.mxu0 %v1370_v0  ;;  %v1159_v9 = vpack.c.bf16 %v253_v8, %v252_v7  ;;  %v331_v11 = vld [vmem:[#allocation5 + $0x180] sm:$0xff]  ;;  %v332_v12 = vld [vmem:[#allocation5 + $0x188] sm:$0xff]  ;;  %v334_v19 = vld [vmem:[#allocation5 + $0x198] sm:$0xff] }
  0x48   :  { %1127 = vmatpush3.bf16.msra.mxu1 %v1126_v30  ;;  %v1165_v16 = vpack.c.bf16 %v332_v12, %v331_v11  ;;  %v1168_v20 = vpack.c.bf16 %v334_v19, %v333_v18  ;;  %v335_v21 = vld [vmem:[#allocation5 + $0x1a0] sm:$0xff]  ;;  %v336_v22 = vld [vmem:[#allocation5 + $0x1a8] sm:$0xff]  ;;  %v337_v24 = vld [vmem:[#allocation5 + $0x1b0] sm:$0xff] }
  0x49   :  { %1128 = vmatprep.subr.bf16.mxu1 %v1370_v0  ;;  %v1171_v23 = vpack.c.bf16 %v336_v22, %v335_v21  ;;  %v338_v25 = vld [vmem:[#allocation5 + $0x1b8] sm:$0xff]  ;;  %v340_v28 = vld [vmem:[#allocation5 + $0x1c8] sm:$0xff]  ;;  %v341_v30 = vld [vmem:[#allocation5 + $0x1d0] sm:$0xff] }
  0x4a   :  { %1106 = vmatpush3.bf16.msra.mxu0 %v1105_v27  ;;  %v1174_v26 = vpack.c.bf16 %v338_v25, %v337_v24  ;;  %v339_v27 = vld [vmem:[#allocation5 + $0x1c0] sm:$0xff]  ;;  %v342_v31 = vld [vmem:[#allocation5 + $0x1d8] sm:$0xff]  ;;  %v344_v34 = vld [vmem:[#allocation5 + $0x1e8] sm:$0xff] }
  0x4b   :  { %1107 = vmatprep.subr.bf16.mxu0 %v1370_v0  ;;  %v1177_v29 = vpack.c.bf16 %v340_v28, %v339_v27  ;;  %v1180_v32 = vpack.c.bf16 %v342_v31, %v341_v30  ;;  %v255_v37 = vld [vmem:[#allocation5 + $0x178] sm:$0xff]  ;;  %v345_v38 = vld [vmem:[#allocation5 + $0x1f0] sm:$0xff]  ;;  %v427_v43 = vld [vmem:[#allocation5 + $0x200] sm:$0xff] }
  0x4c   :  { %1130 = vmatpush3.bf16.msra.mxu1 %v1129_v36  ;;  %v254_v36 = vld [vmem:[#allocation5 + $0x170] sm:$0xff]  ;;  %v346_v40 = vld [vmem:[#allocation5 + $0x1f8] sm:$0xff]  ;;  %v428_v44 = vld [vmem:[#allocation5 + $0x208] sm:$0xff] }
  0x4d   :  { %1131 = vmatprep.subr.bf16.mxu1 %v1370_v0  ;;  %v1186_v41 = vpack.c.bf16 %v346_v40, %v345_v38  ;;  %v1189_v48 = vpack.c.bf16 %v428_v44, %v427_v43  ;;  %v430_v51 = vld [vmem:[#allocation5 + $0x218] sm:$0xff]  ;;  %v432_v54 = vld [vmem:[#allocation5 + $0x228] sm:$0xff]  ;;  %v521_v11 = vld [vmem:[#allocation5 + $0x290] sm:$0xff] }
  0x4e   :  { %1109 = vmatpush3.bf16.msra.mxu0 %v1108_v33  ;;  %v343_v33 = vld [vmem:[#allocation5 + $0x1e0] sm:$0xff]  ;;  %v434_v57 = vld [vmem:[#allocation5 + $0x238] sm:$0xff]  ;;  %v436_v60 = vld [vmem:[#allocation5 + $0x248] sm:$0xff] }
  0x4f   :  { %1110 = vmatprep.subr.bf16.mxu0 %v1370_v0  ;;  %v1183_v35 = vpack.c.bf16 %v344_v34, %v343_v33  ;;  %v438_v63 = vld [vmem:[#allocation5 + $0x258] sm:$0xff]  ;;  %v440_v4 = vld [vmem:[#allocation5 + $0x268] sm:$0xff]  ;;  %v525_v18 = vld [vmem:[#allocation5 + $0x2b0] sm:$0xff] }
  0x50   :  { %1133 = vmatpush3.bf16.msra.mxu1 %v1132_v42  ;;  %v722_v42 = vld [vmem:[#allocation7 + $0x8] ss:$0 sm:$0xff]  ;;  %v442_v7 = vld [vmem:[#allocation5 + $0x278] sm:$0xff]  ;;  %v527_v21 = vld [vmem:[#allocation5 + $0x2c0] sm:$0xff] }
  0x51   :  { %1134 = vmatprep.subr.bf16.mxu1 %v1370_v0  ;;  %v526_v19 = vld [vmem:[#allocation5 + $0x2b8] sm:$0xff]  ;;  %v528_v22 = vld [vmem:[#allocation5 + $0x2c8] sm:$0xff]  ;;  %v529_v24 = vld [vmem:[#allocation5 + $0x2d0] sm:$0xff] }
  0x52   :  { %1112 = vmatpush3.bf16.msra.mxu0 %v1111_v39  ;;  %v1162_v39 = vpack.c.bf16 %v255_v37, %v254_v36  ;;  %v530_v25 = vld [vmem:[#allocation5 + $0x2d8] sm:$0xff]  ;;  %v531_v27 = vld [vmem:[#allocation5 + $0x2e0] sm:$0xff]  ;;  %v532_v28 = vld [vmem:[#allocation5 + $0x2e8] sm:$0xff] }
  0x53   :  { %1113 = vmatprep.subr.bf16.mxu0 %v1370_v0  ;;  %v723_v30 = vld [vmem:[#allocation7 + $0x10] ss:$0 sm:$0xff]  ;;  %v724_v31 = vld [vmem:[#allocation7 + $0x18] ss:$0 sm:$0xff] }
  0x54   :  { %1136 = vmatpush3.bf16.msra.mxu1 %v1135_v46  ;;  %v55_v40 = vld [vmem:[#allocation2 + $0x8] sm:$0xff]  ;;  %v533_v44 = vld [vmem:[#allocation5 + $0x2f0] sm:$0xff] }
  0x55   :  { %1137 = vmatprep.subr.bf16.mxu1 %v1370_v0 }
  0x56   :  { %1115 = vmatpush3.bf16.msra.mxu0 %v1114_v45 }
  0x57   :  { %1140 = vmatprep.subr.bf16.mxu0 %v1370_v0 }
  0x58   :  { %1139 = vmatpush3.bf16.msra.mxu1 %v1138_v50  ;;  %v429_v50 = vld [vmem:[#allocation5 + $0x210] sm:$0xff] }
  0x59   :  { %880 = vmatmul.mubr.f32.vlgmr.msra.gmra.mrb[0].mxu0 %v54_v47  ;;  %1164 = vmatprep.subr.bf16.mxu1 %v1370_v0  ;;  %v1192_v52 = vpack.c.bf16 %v430_v51, %v429_v50  ;;  %v614_v51 = vld [vmem:[#allocation5 + $0x318] sm:$0xff] }
  0x5a   :  { %949 = vmatprep.mubr.msk.f32.mxu0 %vm1371_vm0, %v1372_v1  ;;  %1142 = vmatpush3.bf16.msra.mxu0 %v1141_v53  ;;  %v431_v53 = vld [vmem:[#allocation5 + $0x220] sm:$0xff] }
  0x5b   :  { %1143 = vmatprep.subr.bf16.mxu0 %v1370_v0  ;;  %v1195_v55 = vpack.c.bf16 %v432_v54, %v431_v53  ;;  %v615_v53 = vld [vmem:[#allocation5 + $0x320] sm:$0xff]  ;;  %v616_v54 = vld [vmem:[#allocation5 + $0x328] sm:$0xff] }
  0x5e   :  { %1145 = vmatpush3.bf16.msra.mxu0 %v1144_v56  ;;  %v433_v56 = vld [vmem:[#allocation5 + $0x230] sm:$0xff] }
  0x5f   :  { %1146 = vmatprep.subr.bf16.mxu0 %v1370_v0  ;;  %v1198_v58 = vpack.c.bf16 %v434_v57, %v433_v56  ;;  %v618_v56 = vld [vmem:[#allocation5 + $0x338] sm:$0xff] }
  0x62   :  { %1148 = vmatpush3.bf16.msra.mxu0 %v1147_v59  ;;  %v435_v59 = vld [vmem:[#allocation5 + $0x240] sm:$0xff] }
  0x63   :  { %1149 = vmatprep.subr.bf16.mxu0 %v1370_v0  ;;  %v1201_v61 = vpack.c.bf16 %v436_v60, %v435_v59  ;;  %v620_v59 = vld [vmem:[#allocation5 + $0x348] sm:$0xff] }
  0x66   :  { %1151 = vmatpush3.bf16.msra.mxu0 %v1150_v62  ;;  %v437_v62 = vld [vmem:[#allocation5 + $0x250] sm:$0xff] }
  0x67   :  { %1152 = vmatprep.subr.bf16.mxu0 %v1370_v0  ;;  %v1204_v2 = vpack.c.bf16 %v438_v63, %v437_v62  ;;  %v622_v62 = vld [vmem:[#allocation5 + $0x358] sm:$0xff] }
  0x6a   :  { %1154 = vmatpush3.bf16.msra.mxu0 %v1153_v3  ;;  %v439_v3 = vld [vmem:[#allocation5 + $0x260] sm:$0xff] }
  0x6b   :  { %1155 = vmatprep.subr.bf16.mxu0 %v1370_v0  ;;  %v1207_v5 = vpack.c.bf16 %v440_v4, %v439_v3  ;;  %v624_v3 = vld [vmem:[#allocation5 + $0x368] sm:$0xff] }
  0x6e   :  { %1157 = vmatpush3.bf16.msra.mxu0 %v1156_v6  ;;  %v441_v6 = vld [vmem:[#allocation5 + $0x270] sm:$0xff] }
  0x6f   :  { %1158 = vmatprep.subr.bf16.mxu0 %v1370_v0  ;;  %v1210_v8 = vpack.c.bf16 %v442_v7, %v441_v6 }
  0x72   :  { %1160 = vmatpush3.bf16.msra.mxu0 %v1159_v9  ;;  %v519_v9 = vld [vmem:[#allocation5 + $0x280] sm:$0xff] }
  0x73   :  { %1161 = vmatprep.subr.bf16.mxu0 %v1370_v0 }
  0x76   :  { %1163 = vmatpush3.bf16.msra.mxu0 %v1162_v39 }
  0x77   :  { %1188 = vmatprep.subr.bf16.mxu0 %v1370_v0 }
 0x12c   :  { %v143_v13 = vpop.f32.mrb[0].mxu0 }
 0x12d   :  { %v144_v14 = vadd.f32 %v721_v10, %v143_v13  ;;  %v881_v15 = vpop.f32.mrb[1].mxu0  ;;  %v520_v10 = vld [vmem:[#allocation5 + $0x288] sm:$0xff]  ;;  %v522_v13 = vld [vmem:[#allocation5 + $0x298] sm:$0xff] }
 0x12e   :  { %v1213_v12 = vpack.c.bf16 %v520_v10, %v519_v9  ;;  %v523_v15 = vld [vmem:[#allocation5 + $0x2a0] sm:$0xff]  ;;  %v625_v10 = vld [vmem:[#allocation5 + $0x370] sm:$0xff] }
 0x12f   :  { %v147_v17 = vmax.f32 %v144_v14, 0.0  ;;  %v1216_v14 = vpack.c.bf16 %v522_v13, %v521_v11  ;;  %v626_v11 = vld [vmem:[#allocation5 + $0x378] sm:$0xff]  ;;  %v726_v13 = vld [vmem:[#allocation7 + $0x28] ss:$0 sm:$0xff] }
 0x131   :  { %915 = vmatmul.mubr.f32.vlgmr.msra.gmra.mrb[0].mxu1 %v147_v17 }
 0x132   :  { %1166 = vmatpush3.bf16.msra.mxu1 %v1165_v16  ;;  %984 = vmatprep.mubr.msk.f32.mxu1 %vm1371_vm0, %v1372_v1  ;;  %v524_v16 = vld [vmem:[#allocation5 + $0x2a8] sm:$0xff] }
 0x133   :  { %1167 = vmatprep.subr.bf16.mxu1 %v1370_v0  ;;  %v1219_v17 = vpack.c.bf16 %v524_v16, %v523_v15 }
 0x136   :  { %1169 = vmatpush3.bf16.msra.mxu1 %v1168_v20  ;;  %v1222_v20 = vpack.c.bf16 %v526_v19, %v525_v18  ;;  %v727_v18 = vld [vmem:[#allocation7 + $0x30] ss:$0 sm:$0xff] }
 0x137   :  { %1170 = vmatprep.subr.bf16.mxu1 %v1370_v0 }
 0x13a   :  { %1172 = vmatpush3.bf16.msra.mxu1 %v1171_v23  ;;  %v1225_v23 = vpack.c.bf16 %v528_v22, %v527_v21 }
 0x13b   :  { %1173 = vmatprep.subr.bf16.mxu1 %v1370_v0 }
 0x13e   :  { %1175 = vmatpush3.bf16.msra.mxu1 %v1174_v26  ;;  %v1228_v26 = vpack.c.bf16 %v530_v25, %v529_v24 }
 0x13f   :  { %1176 = vmatprep.subr.bf16.mxu1 %v1370_v0 }
 0x142   :  { %1178 = vmatpush3.bf16.msra.mxu1 %v1177_v29  ;;  %v1231_v29 = vpack.c.bf16 %v532_v28, %v531_v27 }
 0x143   :  { %1179 = vmatprep.subr.bf16.mxu1 %v1370_v0 }
 0x146   :  { %1181 = vmatpush3.bf16.msra.mxu1 %v1180_v32 }
 0x147   :  { %1182 = vmatprep.subr.bf16.mxu1 %v1370_v0 }
 0x14a   :  { %1184 = vmatpush3.bf16.msra.mxu1 %v1183_v35 }
 0x14b   :  { %1185 = vmatprep.subr.bf16.mxu1 %v1370_v0 }
 0x14e   :  { %1187 = vmatpush3.bf16.msra.mxu1 %v1186_v41 }
 0x14f   :  { %1212 = vmatprep.subr.bf16.mxu1 %v1370_v0 }
 0x204   :  { %v235_v45 = vpop.f32.mrb[0].mxu1 }
 0x205   :  { %v236_v46 = vadd.f32 %v722_v42, %v235_v45  ;;  %v916_v47 = vpop.f32.mrb[1].mxu1  ;;  %v534_v45 = vld [vmem:[#allocation5 + $0x2f8] sm:$0xff] }
 0x206   :  { %v611_v47 = vld [vmem:[#allocation5 + $0x300] sm:$0xff] }
 0x207   :  { %v239_v49 = vmax.f32 %v236_v46, 0.0  ;;  %v1234_v46 = vpack.c.bf16 %v534_v45, %v533_v44 }
 0x209   :  { %950 = vmatmul.mubr.f32.vlgmr.msra.gmra.mrb[2].mxu0 %v239_v49  ;;  %985 = vmatmul.mubr.f32.vlgmr.msra.gmra.mrb[2].mxu1 %v239_v49  ;;  %v613_v49 = vld [vmem:[#allocation5 + $0x310] sm:$0xff] }
 0x20a   :  { %1190 = vmatpush3.bf16.msra.mxu0 %v1189_v48  ;;  %1019 = vmatprep.mubr.msk.f32.mxu0 %vm1371_vm0, %v1372_v1  ;;  %v612_v48 = vld [vmem:[#allocation5 + $0x308] sm:$0xff] }
 0x20b   :  { %1191 = vmatprep.subr.bf16.mxu0 %v1370_v0  ;;  %1054 = vmatprep.mubr.msk.f32.mxu1 %vm1371_vm0, %v1372_v1  ;;  %v1237_v50 = vpack.c.bf16 %v612_v48, %v611_v47 }
 0x20c   :  { %1214 = vmatpush3.bf16.msra.mxu1 %v1213_v12  ;;  %v1258_v12 = vpack.c.bf16 %v626_v11, %v625_v10 }
 0x20d   :  { %1215 = vmatprep.subr.bf16.mxu1 %v1370_v0 }
 0x20e   :  { %1193 = vmatpush3.bf16.msra.mxu0 %v1192_v52  ;;  %v1240_v52 = vpack.c.bf16 %v614_v51, %v613_v49 }
 0x20f   :  { %1194 = vmatprep.subr.bf16.mxu0 %v1370_v0 }
 0x210   :  { %1217 = vmatpush3.bf16.msra.mxu1 %v1216_v14 }
 0x211   :  { %1218 = vmatprep.subr.bf16.mxu1 %v1370_v0 }
 0x212   :  { %1196 = vmatpush3.bf16.msra.mxu0 %v1195_v55  ;;  %v1243_v55 = vpack.c.bf16 %v616_v54, %v615_v53 }
 0x213   :  { %1197 = vmatprep.subr.bf16.mxu0 %v1370_v0 }
 0x214   :  { %1220 = vmatpush3.bf16.msra.mxu1 %v1219_v17 }
 0x215   :  { %1221 = vmatprep.subr.bf16.mxu1 %v1370_v0 }
 0x216   :  { %1199 = vmatpush3.bf16.msra.mxu0 %v1198_v58  ;;  %v619_v58 = vld [vmem:[#allocation5 + $0x340] sm:$0xff] }
 0x217   :  { %1200 = vmatprep.subr.bf16.mxu0 %v1370_v0  ;;  %v1249_v60 = vpack.c.bf16 %v620_v59, %v619_v58 }
 0x218   :  { %1223 = vmatpush3.bf16.msra.mxu1 %v1222_v20 }
 0x219   :  { %1224 = vmatprep.subr.bf16.mxu1 %v1370_v0 }
 0x21a   :  { %1202 = vmatpush3.bf16.msra.mxu0 %v1201_v61  ;;  %v621_v61 = vld [vmem:[#allocation5 + $0x350] sm:$0xff] }
 0x21b   :  { %1203 = vmatprep.subr.bf16.mxu0 %v1370_v0  ;;  %v1252_v63 = vpack.c.bf16 %v622_v62, %v621_v61 }
 0x21c   :  { %1226 = vmatpush3.bf16.msra.mxu1 %v1225_v23 }
 0x21d   :  { %1227 = vmatprep.subr.bf16.mxu1 %v1370_v0 }
 0x21e   :  { %1205 = vmatpush3.bf16.msra.mxu0 %v1204_v2  ;;  %v623_v2 = vld [vmem:[#allocation5 + $0x360] sm:$0xff] }
 0x21f   :  { %1206 = vmatprep.subr.bf16.mxu0 %v1370_v0  ;;  %v1255_v4 = vpack.c.bf16 %v624_v3, %v623_v2 }
 0x220   :  { %1229 = vmatpush3.bf16.msra.mxu1 %v1228_v26 }
 0x221   :  { %1230 = vmatprep.subr.bf16.mxu1 %v1370_v0 }
 0x222   :  { %1208 = vmatpush3.bf16.msra.mxu0 %v1207_v5  ;;  %v725_v5 = vld [vmem:[#allocation7 + $0x20] ss:$0 sm:$0xff] }
 0x223   :  { %1209 = vmatprep.subr.bf16.mxu0 %v1370_v0 }
 0x224   :  { %1232 = vmatpush3.bf16.msra.mxu1 %v1231_v29 }
 0x225   :  { %1233 = vmatprep.subr.bf16.mxu1 %v1370_v0 }
 0x226   :  { %1211 = vmatpush3.bf16.msra.mxu0 %v1210_v8 }
 0x227   :  { %1236 = vmatprep.subr.bf16.mxu0 %v1370_v0 }
 0x228   :  { %1235 = vmatpush3.bf16.msra.mxu1 %v1234_v46 }
 0x2dc   :  { %v327_v32 = vpop.f32.mrb[2].mxu0  ;;  %v418_v33 = vpop.f32.mrb[2].mxu1 }
 0x2dd   :  { %v328_v34 = vadd.f32 %v723_v30, %v327_v32  ;;  %v419_v35 = vadd.f32 %v724_v31, %v418_v33  ;;  %v951_v36 = vpop.f32.mrb[3].mxu0  ;;  %v986_v37 = vpop.f32.mrb[3].mxu1 }
 0x2df   :  { %703 = vst [vmem:[#allocation8 + $0x8] sm:$0xff] %v328_v34  ;;  %v422_v38 = vmul.f32 0.5, %v419_v35  ;;  %704 = vst [vmem:[#allocation8 + $0x10] sm:$0xff] %v419_v35 }
 0x2e1   :  { %v423_v39 = vmul.f32 1.442695, %v422_v38 }
 0x2e3   :  { %1269 = vpow2.f32 %v423_v39 }
 0x2ed   :  { %v1270_v41 = vpop.eup %1269 }
 0x2ee   :  { %v425_v42 = vmul.f32 %v1270_v41, %v55_v40 }
 0x2f0   :  { %v426_v43 = vadd.f32 %v425_v42, %v328_v34 }
 0x2f2   :  { %1020 = vmatmul.mubr.f32.vlgmr.msra.gmra.mrb[4].mxu0 %v426_v43 }
 0x2f3   :  { %1089 = vmatprep.mubr.msk.f32.mxu0 %vm1371_vm0, %v1372_v1  ;;  %1238 = vmatpush3.bf16.msra.mxu0 %v1237_v50  ;;  %v617_v1 = vld [vmem:[#allocation5 + $0x330] sm:$0xff] }
 0x2f4   :  { %1239 = vmatprep.subr.bf16.mxu0 %v1370_v0  ;;  %v1246_v57 = vpack.c.bf16 %v618_v56, %v617_v1 }
 0x2f7   :  { %1241 = vmatpush3.bf16.msra.mxu0 %v1240_v52 }
 0x2f8   :  { %1242 = vmatprep.subr.bf16.mxu0 %v1370_v0 }
 0x2fb   :  { %1244 = vmatpush3.bf16.msra.mxu0 %v1243_v55 }
 0x2fc   :  { %1245 = vmatprep.subr.bf16.mxu0 %v1370_v0 }
 0x2ff   :  { %1247 = vmatpush3.bf16.msra.mxu0 %v1246_v57 }
 0x300   :  { %1248 = vmatprep.subr.bf16.mxu0 %v1370_v0 }
 0x303   :  { %1250 = vmatpush3.bf16.msra.mxu0 %v1249_v60 }
 0x304   :  { %1251 = vmatprep.subr.bf16.mxu0 %v1370_v0 }
 0x307   :  { %1253 = vmatpush3.bf16.msra.mxu0 %v1252_v63 }
 0x308   :  { %1254 = vmatprep.subr.bf16.mxu0 %v1370_v0 }
 0x30b   :  { %1256 = vmatpush3.bf16.msra.mxu0 %v1255_v4 }
 0x30c   :  { %1257 = vmatprep.subr.bf16.mxu0 %v1370_v0 }
 0x30f   :  { %1259 = vmatpush3.bf16.msra.mxu0 %v1258_v12 }
 0x3c5   :  { %v514_v6 = vpop.f32.mrb[4].mxu0 }
 0x3c6   :  { %v515_v7 = vadd.f32 %v725_v5, %v514_v6  ;;  %v1021_v8 = vpop.f32.mrb[5].mxu0 }
 0x3c8   :  { %v518_v9 = vmax.f32 %v515_v7, 0.0 }
 0x3ca   :  { %1055 = vmatmul.mubr.f32.vlgmr.msra.gmra.mrb[4].mxu1 %v518_v9 }
 0x49d   :  { %v606_v14 = vpop.f32.mrb[4].mxu1 }
 0x49e   :  { %v607_v15 = vadd.f32 %v726_v13, %v606_v14  ;;  %v1056_v16 = vpop.f32.mrb[5].mxu1 }
 0x4a0   :  { %v610_v17 = vmax.f32 %v607_v15, 0.0 }
 0x4a2   :  { %1090 = vmatmul.mubr.f32.vlgmr.msra.gmra.mrb[6].mxu0 %v610_v17 }
 0x575   :  { %v698_v0 = vpop.f32.mrb[6].mxu0 }
 0x576   :  { %v699_v19 = vadd.f32 %v727_v18, %v698_v0  ;;  %v1091_v20 = vpop.f32.mrb[7].mxu0 }
 0x578   :  { %702 = vst [vmem:[#allocation8] sm:$0xff] %v699_v19 }
 0x579   :  { %1348 = shalt.err (!%p1345_p0)
}
 0x57a   :  { %s1349_s25 = scalar_lea.hbm %s1521_s3, 384 }
 0x57b   :  { %p1350_p1 = scmp.ne.s32.totalorder %s1521_s3, %s1349_s25  ;;  %p1353_p2 = scmp.lt.u32.totalorder %s1349_s25, %s1521_s3 }
 0x57d   :  { %p1355_p3 = pnand %p1353_p2, %p1350_p1 }
 0x57f   :  { %1358 = shalt.err (!%p1355_p3)
}
 0x580   :  { %714 = dma.vmem_to_hbm [thread:$0]  %s712_s21, 384, %s1521_s3, [#allocation4]  }
 0x581   :  { %1363 = dma.done.wait [#allocation4], 384  }
 0x582   :  { %1364 = vsyncadd [#allocation4], 4294966912 }
 0x583   :  { %718 = vsyncpa [#allocation3], 1 }
 0x584   :  { %719 = vsyncpa [#allocation6], 1 }
 0x585   :  { %720 = vsyncpa [#allocation4], 1 }

</bundles_post_ra>
